<compile_context>
chip_gen: v6e
topology: v6e:2x2x1
jax: 0.10.0
libtpu: 0.0.40
codegen_flags: <defaults>
</compile_context>

<pallas_src>
import jax
import jax.numpy as jnp
from jax.experimental import pallas as pl
from jax.experimental.pallas import tpu as pltpu


def _round_up(x, m):
    return ((x + m - 1) // m) * m


def _vae_forward_kernel(x_ref, eps_ref,
                        w1_ref, b1_ref,
                        w2mu_ref, b2mu_ref,
                        w2lv_ref, b2lv_ref,
                        w3_ref, b3_ref,
                        w4_ref, b4_ref,
                        out_ref):
    # ---- encoder layer 1: Linear + ReLU (bf16 MXU inputs, f32 accumulate) ----
    x = x_ref[...]                                                        # bf16 [TB, Dp]
    h = jnp.dot(x, w1_ref[...], preferred_element_type=jnp.float32) + b1_ref[...]
    h = jnp.maximum(h, 0.0).astype(jnp.bfloat16)                          # [TB, Hp]

    # ---- encoder layer 2: two lane-aligned heads -> mu, lv directly ----
    mu = jnp.dot(h, w2mu_ref[...], preferred_element_type=jnp.float32) + b2mu_ref[...]
    lv = jnp.dot(h, w2lv_ref[...], preferred_element_type=jnp.float32) + b2lv_ref[...]

    # ---- reparametrise (training branch): z = mu + exp(0.5*lv) * eps ----
    z = (mu + jnp.exp(0.5 * lv) * eps_ref[...]).astype(jnp.bfloat16)      # [TB, Lp]

    # ---- decoder: Linear + ReLU + Linear + sigmoid ----
    h2 = jnp.dot(z, w3_ref[...], preferred_element_type=jnp.float32) + b3_ref[...]
    h2 = jnp.maximum(h2, 0.0).astype(jnp.bfloat16)                        # [TB, Hp]
    logits = jnp.dot(h2, w4_ref[...], preferred_element_type=jnp.float32) + b4_ref[...]
    out_ref[...] = jax.nn.sigmoid(logits)                                 # f32 [TB, Dp]


def init_params(key, d_in, hidden, latents):
    """Deterministic nn.Linear-style init: U(-1/sqrt(fan_in), 1/sqrt(fan_in))."""
    ks = jax.random.split(key, 8)

    def lin(kw, kb, fan_in, fan_out):
        bound = 1.0 / jnp.sqrt(fan_in)
        w = jax.random.uniform(kw, (fan_in, fan_out), jnp.float32, -bound, bound)
        b = jax.random.uniform(kb, (1, fan_out), jnp.float32, -bound, bound)
        return w, b

    w1, b1 = lin(ks[0], ks[1], d_in, hidden)          # encoder layer 1
    w2, b2 = lin(ks[2], ks[3], hidden, 2 * latents)   # encoder layer 2 -> [mu | lv]
    w3, b3 = lin(ks[4], ks[5], latents, hidden)       # decoder layer 1
    w4, b4 = lin(ks[6], ks[7], hidden, d_in)          # decoder layer 2
    return (w1, b1, w2, b2, w3, b3, w4, b4)


def _prepare_params(params, latents, d_in_pad, hidden_pad, latents_pad):
    """Split w2 into mu/lv heads, zero-pad all dims to lane multiples, bf16 weights."""
    w1, b1, w2, b2, w3, b3, w4, b4 = params

    def pad2(a, rows, cols):
        return jnp.pad(a, ((0, rows - a.shape[0]), (0, cols - a.shape[1])))

    w2_mu, w2_lv = w2[:, :latents], w2[:, latents:]
    b2_mu, b2_lv = b2[:, :latents], b2[:, latents:]

    return (
        pad2(w1, d_in_pad, hidden_pad).astype(jnp.bfloat16),
        pad2(b1, 1, hidden_pad),
        pad2(w2_mu, hidden_pad, latents_pad).astype(jnp.bfloat16),
        pad2(b2_mu, 1, latents_pad),
        pad2(w2_lv, hidden_pad, latents_pad).astype(jnp.bfloat16),
        pad2(b2_lv, 1, latents_pad),
        pad2(w3, latents_pad, hidden_pad).astype(jnp.bfloat16),
        pad2(b3, 1, hidden_pad),
        pad2(w4, hidden_pad, d_in_pad).astype(jnp.bfloat16),
        pad2(b4, 1, d_in_pad),
    )


def vae_forward(x_nchw, eps, params, *, hidden, latents, tb=256):
    """x_nchw: [B, C, H, W] f32, eps: [B, latents] f32 (training-mode noise)."""
    B, C, H, W = x_nchw.shape
    d_in = C * H * W

    # Lane / MXU friendly padded dims.
    d_in_pad = _round_up(d_in, 128)
    hidden_pad = _round_up(hidden, 128)
    latents_pad = _round_up(latents, 128)

    # Adaptive batch tile: small batches only pad to a sublane multiple (8),
    # large batches use full MXU-sized tiles of `tb` rows.
    if B <= tb:
        tb_eff = _round_up(B, 8)
        b_pad = tb_eff
    else:
        tb_eff = tb
        b_pad = _round_up(B, tb)
    n_blocks = b_pad // tb_eff

    x_flat = x_nchw.reshape(B, d_in)                  # same as torch .view(B, -1)
    x_p = jnp.zeros((b_pad, d_in_pad), jnp.bfloat16).at[:B, :d_in].set(
        x_flat.astype(jnp.bfloat16))
    eps_p = jnp.zeros((b_pad, latents_pad), jnp.float32).at[:B, :latents].set(eps)

    pparams = _prepare_params(params, latents, d_in_pad, hidden_pad, latents_pad)

    def batch_spec(shape):
        return pl.BlockSpec(shape, lambda i: (i, 0))

    def resident_spec(shape):
        return pl.BlockSpec(shape, lambda i: (0, 0))   # stays in VMEM across grid steps

    in_specs = [batch_spec((tb_eff, d_in_pad)),        # x (streamed per batch tile)
                batch_spec((tb_eff, latents_pad))]     # eps (streamed per batch tile)
    in_specs += [resident_spec(p.shape) for p in pparams]
    out_spec = batch_spec((tb_eff, d_in_pad))

    # VMEM budget: resident weights + double-buffered streamed blocks + activation headroom.
    f32, bf16 = 4, 2
    weight_bytes = sum(int(p.size) * p.dtype.itemsize for p in pparams)
    stream_bytes = 2 * (tb_eff * d_in_pad * bf16        # x in
                        + tb_eff * latents_pad * f32    # eps in
                        + tb_eff * d_in_pad * f32)      # out
    vmem_limit = int(weight_bytes + stream_bytes + (16 << 20))

    out_flat_p = pl.pallas_call(
        _vae_forward_kernel,
        out_shape=jax.ShapeDtypeStruct((b_pad, d_in_pad), jnp.float32),
        grid=(n_blocks,),
        in_specs=in_specs,
        out_specs=out_spec,
        compiler_params=pltpu.CompilerParams(
            dimension_semantics=("parallel",),
            vmem_limit_bytes=vmem_limit),
    )(x_p, eps_p, *pparams)

    return out_flat_p[:B, :d_in].reshape(B, C, H, W)


if __name__ == "__main__":
    # Small shapes consistent with a VAE forward pass.
    B, C, H, W = 2, 4, 16, 16
    hidden, latents = 32, 8
    d_in = C * H * W

    key = jax.random.PRNGKey(0)
    k_x, k_eps, k_par = jax.random.split(key, 3)

    x = jax.random.uniform(k_x, (B, C, H, W), jnp.float32)      # NCHW input "image"
    eps = jax.random.normal(k_eps, (B, latents), jnp.float32)   # reparam noise
    params = init_params(k_par, d_in, hidden, latents)

    x_hat = vae_forward(x, eps, params, hidden=hidden, latents=latents)
    jax.block_until_ready(x_hat)

    # Pure-JAX f32 reference (loose tolerance: kernel uses bf16 MXU inputs).
    w1, b1, w2, b2, w3, b3, w4, b4 = params
    xf = x.reshape(B, d_in)
    h_ref = jnp.maximum(xf @ w1 + b1, 0.0)
    enc = h_ref @ w2 + b2
    mu_r, lv_r = enc[:, :latents], enc[:, latents:]
    z_r = mu_r + jnp.exp(0.5 * lv_r) * eps
    h2_r = jnp.maximum(z_r @ w3 + b3, 0.0)
    ref = jax.nn.sigmoid(h2_r @ w4 + b4).reshape(B, C, H, W)

    assert x_hat.shape == (B, C, H, W)
    assert x_hat.dtype == jnp.float32
    assert float(jnp.max(jnp.abs(x_hat - ref))) < 5e-2
    print("KERNEL_OK")
</pallas_src>

<mosaic_0001>
module attributes {stable_mosaic.version = 11 : i64} {
  func.func @_vae_forward_kernel(%arg0: i32, %arg1: memref<8x1024xbf16, #tpu.memory_space<vmem>>, %arg2: memref<8x128xf32, #tpu.memory_space<vmem>>, %arg3: memref<1024x128xbf16, #tpu.memory_space<vmem>>, %arg4: memref<1x128xf32, #tpu.memory_space<vmem>>, %arg5: memref<128x128xbf16, #tpu.memory_space<vmem>>, %arg6: memref<1x128xf32, #tpu.memory_space<vmem>>, %arg7: memref<128x128xbf16, #tpu.memory_space<vmem>>, %arg8: memref<1x128xf32, #tpu.memory_space<vmem>>, %arg9: memref<128x128xbf16, #tpu.memory_space<vmem>>, %arg10: memref<1x128xf32, #tpu.memory_space<vmem>>, %arg11: memref<128x1024xbf16, #tpu.memory_space<vmem>>, %arg12: memref<1x1024xf32, #tpu.memory_space<vmem>>, %arg13: memref<8x1024xf32, #tpu.memory_space<vmem>>) attributes {dimension_semantics = [#tpu.dimension_semantics<parallel>], iteration_bounds = array<i64: 1>, scalar_prefetch = 0 : i64, scratch_operands = 0 : i64, tpu.core_type = #tpu.core_type<tc>, window_params = [{transform_indices = @transform_0, window_bounds = array<i64: 8, 1024>}, {transform_indices = @transform_1, window_bounds = array<i64: 8, 128>}, {pipeline_mode = #tpu.pipeline_mode<synchronous>, transform_indices = @transform_2, window_bounds = array<i64: 1024, 128>}, {pipeline_mode = #tpu.pipeline_mode<synchronous>, transform_indices = @transform_3, window_bounds = array<i64: 1, 128>}, {pipeline_mode = #tpu.pipeline_mode<synchronous>, transform_indices = @transform_4, window_bounds = array<i64: 128, 128>}, {pipeline_mode = #tpu.pipeline_mode<synchronous>, transform_indices = @transform_5, window_bounds = array<i64: 1, 128>}, {pipeline_mode = #tpu.pipeline_mode<synchronous>, transform_indices = @transform_6, window_bounds = array<i64: 128, 128>}, {pipeline_mode = #tpu.pipeline_mode<synchronous>, transform_indices = @transform_7, window_bounds = array<i64: 1, 128>}, {pipeline_mode = #tpu.pipeline_mode<synchronous>, transform_indices = @transform_8, window_bounds = array<i64: 128, 128>}, {pipeline_mode = #tpu.pipeline_mode<synchronous>, transform_indices = @transform_9, window_bounds = array<i64: 1, 128>}, {pipeline_mode = #tpu.pipeline_mode<synchronous>, transform_indices = @transform_10, window_bounds = array<i64: 128, 1024>}, {pipeline_mode = #tpu.pipeline_mode<synchronous>, transform_indices = @transform_11, window_bounds = array<i64: 1, 1024>}, {transform_indices = @transform_12, window_bounds = array<i64: 8, 1024>}]} {
    %c0 = arith.constant 0 : index
    %c0_0 = arith.constant 0 : index
    %0 = vector.load %arg1[%c0, %c0_0] : memref<8x1024xbf16, #tpu.memory_space<vmem>>, vector<8x1024xbf16>
    %c0_1 = arith.constant 0 : index
    %c0_2 = arith.constant 0 : index
    %1 = vector.load %arg3[%c0_1, %c0_2] : memref<1024x128xbf16, #tpu.memory_space<vmem>>, vector<1024x128xbf16>
    %cst = arith.constant dense<0.000000e+00> : vector<8x128xf32>
    %2 = tpu.matmul %0, %1, %cst {dimension_numbers = #tpu.dot_dimension_numbers<[1], [0], [0], [1], [0, 0, 1, 1], [], []>} : vector<8x1024xbf16>, vector<1024x128xbf16>, vector<8x128xf32> -> vector<8x128xf32>
    %c0_3 = arith.constant 0 : index
    %c0_4 = arith.constant 0 : index
    %3 = vector.load %arg4[%c0_3, %c0_4] : memref<1x128xf32, #tpu.memory_space<vmem>>, vector<1x128xf32>
    %4 = vector.broadcast %3 : vector<1x128xf32> to vector<8x128xf32>
    %5 = arith.addf %2, %4 : vector<8x128xf32>
    %cst_5 = arith.constant 0.000000e+00 : f32
    %6 = vector.broadcast %cst_5 : f32 to vector<8x128xf32>
    %7 = arith.maximumf %5, %6 : vector<8x128xf32>
    %8 = arith.truncf %7 : vector<8x128xf32> to vector<8x128xbf16>
    %c0_6 = arith.constant 0 : index
    %c0_7 = arith.constant 0 : index
    %9 = vector.load %arg5[%c0_6, %c0_7] : memref<128x128xbf16, #tpu.memory_space<vmem>>, vector<128x128xbf16>
    %cst_8 = arith.constant dense<0.000000e+00> : vector<8x128xf32>
    %10 = tpu.matmul %8, %9, %cst_8 {dimension_numbers = #tpu.dot_dimension_numbers<[1], [0], [0], [1], [0, 0, 1, 1], [], []>} : vector<8x128xbf16>, vector<128x128xbf16>, vector<8x128xf32> -> vector<8x128xf32>
    %c0_9 = arith.constant 0 : index
    %c0_10 = arith.constant 0 : index
    %11 = vector.load %arg6[%c0_9, %c0_10] : memref<1x128xf32, #tpu.memory_space<vmem>>, vector<1x128xf32>
    %12 = vector.broadcast %11 : vector<1x128xf32> to vector<8x128xf32>
    %13 = arith.addf %10, %12 : vector<8x128xf32>
    %c0_11 = arith.constant 0 : index
    %c0_12 = arith.constant 0 : index
    %14 = vector.load %arg7[%c0_11, %c0_12] : memref<128x128xbf16, #tpu.memory_space<vmem>>, vector<128x128xbf16>
    %cst_13 = arith.constant dense<0.000000e+00> : vector<8x128xf32>
    %15 = tpu.matmul %8, %14, %cst_13 {dimension_numbers = #tpu.dot_dimension_numbers<[1], [0], [0], [1], [0, 0, 1, 1], [], []>} : vector<8x128xbf16>, vector<128x128xbf16>, vector<8x128xf32> -> vector<8x128xf32>
    %c0_14 = arith.constant 0 : index
    %c0_15 = arith.constant 0 : index
    %16 = vector.load %arg8[%c0_14, %c0_15] : memref<1x128xf32, #tpu.memory_space<vmem>>, vector<1x128xf32>
    %17 = vector.broadcast %16 : vector<1x128xf32> to vector<8x128xf32>
    %18 = arith.addf %15, %17 : vector<8x128xf32>
    %cst_16 = arith.constant 5.000000e-01 : f32
    %19 = vector.broadcast %cst_16 : f32 to vector<8x128xf32>
    %20 = arith.mulf %19, %18 : vector<8x128xf32>
    %21 = math.exp %20 : vector<8x128xf32>
    %c0_17 = arith.constant 0 : index
    %c0_18 = arith.constant 0 : index
    %22 = vector.load %arg2[%c0_17, %c0_18] : memref<8x128xf32, #tpu.memory_space<vmem>>, vector<8x128xf32>
    %23 = arith.mulf %21, %22 : vector<8x128xf32>
    %24 = arith.addf %13, %23 : vector<8x128xf32>
    %25 = arith.truncf %24 : vector<8x128xf32> to vector<8x128xbf16>
    %c0_19 = arith.constant 0 : index
    %c0_20 = arith.constant 0 : index
    %26 = vector.load %arg9[%c0_19, %c0_20] : memref<128x128xbf16, #tpu.memory_space<vmem>>, vector<128x128xbf16>
    %cst_21 = arith.constant dense<0.000000e+00> : vector<8x128xf32>
    %27 = tpu.matmul %25, %26, %cst_21 {dimension_numbers = #tpu.dot_dimension_numbers<[1], [0], [0], [1], [0, 0, 1, 1], [], []>} : vector<8x128xbf16>, vector<128x128xbf16>, vector<8x128xf32> -> vector<8x128xf32>
    %c0_22 = arith.constant 0 : index
    %c0_23 = arith.constant 0 : index
    %28 = vector.load %arg10[%c0_22, %c0_23] : memref<1x128xf32, #tpu.memory_space<vmem>>, vector<1x128xf32>
    %29 = vector.broadcast %28 : vector<1x128xf32> to vector<8x128xf32>
    %30 = arith.addf %27, %29 : vector<8x128xf32>
    %cst_24 = arith.constant 0.000000e+00 : f32
    %31 = vector.broadcast %cst_24 : f32 to vector<8x128xf32>
    %32 = arith.maximumf %30, %31 : vector<8x128xf32>
    %33 = arith.truncf %32 : vector<8x128xf32> to vector<8x128xbf16>
    %c0_25 = arith.constant 0 : index
    %c0_26 = arith.constant 0 : index
    %34 = vector.load %arg11[%c0_25, %c0_26] : memref<128x1024xbf16, #tpu.memory_space<vmem>>, vector<128x1024xbf16>
    %cst_27 = arith.constant dense<0.000000e+00> : vector<8x1024xf32>
    %35 = tpu.matmul %33, %34, %cst_27 {dimension_numbers = #tpu.dot_dimension_numbers<[1], [0], [0], [1], [0, 0, 1, 1], [], []>} : vector<8x128xbf16>, vector<128x1024xbf16>, vector<8x1024xf32> -> vector<8x1024xf32>
    %c0_28 = arith.constant 0 : index
    %c0_29 = arith.constant 0 : index
    %36 = vector.load %arg12[%c0_28, %c0_29] : memref<1x1024xf32, #tpu.memory_space<vmem>>, vector<1x1024xf32>
    %37 = vector.broadcast %36 : vector<1x1024xf32> to vector<8x1024xf32>
    %38 = arith.addf %35, %37 : vector<8x1024xf32>
    %39 = arith.negf %38 : vector<8x1024xf32>
    %40 = math.exp %39 : vector<8x1024xf32>
    %cst_30 = arith.constant 1.000000e+00 : f32
    %41 = vector.broadcast %cst_30 : f32 to vector<8x1024xf32>
    %42 = arith.addf %41, %40 : vector<8x1024xf32>
    %43 = arith.divf %41, %42 : vector<8x1024xf32>
    %c0_31 = arith.constant 0 : index
    %c0_32 = arith.constant 0 : index
    %44 = vector.load %arg13[%c0_31, %c0_32] : memref<8x1024xf32, #tpu.memory_space<vmem>>, vector<8x1024xf32>
    tpu.vector_store %arg13[%c0_31, %c0_32], %43 {strides = array<i32>} : memref<8x1024xf32, #tpu.memory_space<vmem>>, vector<8x1024xf32>,
    return
  }
  func.func @transform_0(%arg0: i32) -> (i32, i32) {
    %c0_i32 = arith.constant 0 : i32
    %c0_i32_0 = arith.constant 0 : i32
    return %arg0, %c0_i32 : i32, i32
  }
  func.func @transform_1(%arg0: i32) -> (i32, i32) {
    %c0_i32 = arith.constant 0 : i32
    %c0_i32_0 = arith.constant 0 : i32
    return %arg0, %c0_i32 : i32, i32
  }
  func.func @transform_2(%arg0: i32) -> (i32, i32) {
    %c0_i32 = arith.constant 0 : i32
    %c0_i32_0 = arith.constant 0 : i32
    %c0_i32_1 = arith.constant 0 : i32
    return %c0_i32, %c0_i32_0 : i32, i32
  }
  func.func @transform_3(%arg0: i32) -> (i32, i32) {
    %c0_i32 = arith.constant 0 : i32
    %c0_i32_0 = arith.constant 0 : i32
    %c0_i32_1 = arith.constant 0 : i32
    return %c0_i32, %c0_i32_0 : i32, i32
  }
  func.func @transform_4(%arg0: i32) -> (i32, i32) {
    %c0_i32 = arith.constant 0 : i32
    %c0_i32_0 = arith.constant 0 : i32
    %c0_i32_1 = arith.constant 0 : i32
    return %c0_i32, %c0_i32_0 : i32, i32
  }
  func.func @transform_5(%arg0: i32) -> (i32, i32) {
    %c0_i32 = arith.constant 0 : i32
    %c0_i32_0 = arith.constant 0 : i32
    %c0_i32_1 = arith.constant 0 : i32
    return %c0_i32, %c0_i32_0 : i32, i32
  }
  func.func @transform_6(%arg0: i32) -> (i32, i32) {
    %c0_i32 = arith.constant 0 : i32
    %c0_i32_0 = arith.constant 0 : i32
    %c0_i32_1 = arith.constant 0 : i32
    return %c0_i32, %c0_i32_0 : i32, i32
  }
  func.func @transform_7(%arg0: i32) -> (i32, i32) {
    %c0_i32 = arith.constant 0 : i32
    %c0_i32_0 = arith.constant 0 : i32
    %c0_i32_1 = arith.constant 0 : i32
    return %c0_i32, %c0_i32_0 : i32, i32
  }
  func.func @transform_8(%arg0: i32) -> (i32, i32) {
    %c0_i32 = arith.constant 0 : i32
    %c0_i32_0 = arith.constant 0 : i32
    %c0_i32_1 = arith.constant 0 : i32
    return %c0_i32, %c0_i32_0 : i32, i32
  }
  func.func @transform_9(%arg0: i32) -> (i32, i32) {
    %c0_i32 = arith.constant 0 : i32
    %c0_i32_0 = arith.constant 0 : i32
    %c0_i32_1 = arith.constant 0 : i32
    return %c0_i32, %c0_i32_0 : i32, i32
  }
  func.func @transform_10(%arg0: i32) -> (i32, i32) {
    %c0_i32 = arith.constant 0 : i32
    %c0_i32_0 = arith.constant 0 : i32
    %c0_i32_1 = arith.constant 0 : i32
    return %c0_i32, %c0_i32_0 : i32, i32
  }
  func.func @transform_11(%arg0: i32) -> (i32, i32) {
    %c0_i32 = arith.constant 0 : i32
    %c0_i32_0 = arith.constant 0 : i32
    %c0_i32_1 = arith.constant 0 : i32
    return %c0_i32, %c0_i32_0 : i32, i32
  }
  func.func @transform_12(%arg0: i32) -> (i32, i32) {
    %c0_i32 = arith.constant 0 : i32
    %c0_i32_0 = arith.constant 0 : i32
    return %arg0, %c0_i32 : i32, i32
  }
}

</mosaic_0001>

<bundles_post_ra>
// kernel: tpu_custom_call.1
= control target key start
LH: loop header
LB: loop body
LE: loop exit
PB: predicated region body
PF: predicated region fallthrough
CT: control target
= control target key end

     0   :  { %17 = vsyncpa [#allocation3], 0  ;;  %s2693_s0 = inlined_call_operand.hbm [shape: bf16[8,1024], index: 0, kind: input, shape index: {}]   ;;  %s2694_s1 = inlined_call_operand.hbm [shape: f32[8,128], index: 1, kind: input, shape index: {}]   ;;  %s2695_s2 = inlined_call_operand.hbm [shape: bf16[1024,128], index: 2, kind: input, shape index: {}]   ;;  %s2696_s3 = inlined_call_operand.vmem [shape: f32[1,128], index: 3, kind: input, shape index: {}]   ;;  %s2697_s4 = inlined_call_operand.hbm [shape: bf16[128,128], index: 4, kind: input, shape index: {}]   ;;  %s2698_s5 = inlined_call_operand.vmem [shape: f32[1,128], index: 5, kind: input, shape index: {}]   ;;  %s2699_s6 = inlined_call_operand.hbm [shape: bf16[128,128], index: 6, kind: input, shape index: {}]   ;;  %s2700_s7 = inlined_call_operand.vmem [shape: f32[1,128], index: 7, kind: input, shape index: {}]   ;;  %s2701_s8 = inlined_call_operand.hbm [shape: bf16[128,128], index: 8, kind: input, shape index: {}]   ;;  %s2702_s9 = inlined_call_operand.vmem [shape: f32[1,128], index: 9, kind: input, shape index: {}]   ;;  %s2703_s10 = inlined_call_operand.hbm [shape: bf16[128,1024], index: 10, kind: input, shape index: {}]   ;;  %s2704_s11 = inlined_call_operand.vmem [shape: f32[1,1024], index: 11, kind: input, shape index: {}]   ;;  %s2705_s12 = inlined_call_operand.hbm [shape: f32[8,1024], index: 12, kind: output, shape index: {}]  }
   0x1   :  { %18 = vsyncpa [#allocation6], 0 }
   0x2   :  { %19 = vsyncpa [#allocation9], 0 }
   0x3   :  { %20 = vsyncpa [#allocation12], 0 }
   0x4   :  { %21 = vsyncpa [#allocation4], 0  ;;  %s2515_s21 = smov [#allocation5]  }
   0x5   :  { %s38_s22 = sshll.u32 %s2515_s21, 4  ;;  %s39_s22 = int_to_ptr.vmem [resolvable:$true] %s38_s22 }
   0x6   :  { %s2353_s23 = scalar_lea.vmem %s39_s22, 128  ;;  %p2358_p1 = scmp.lt.s32.totalorder %s39_s22, %s39_s22 }
   0x7   :  { %p2354_p0 = scmp.ne.s32.totalorder %s39_s22, %s2353_s23  ;;  %p2359_p2 = scmp.lt.s32.totalorder %s2353_s23, %s2353_s23 }
   0x9   :  { %p2360_p3 = por %p2359_p2, %p2358_p1 }
   0xb   :  { %p2361_p4 = pnand %p2360_p3, %p2354_p0 }
   0xd   :  { %2364 = shalt.err (!%p2361_p4)
}
   0xe   :  { %41 = dma.hbm_to_vmem [thread:$0]  %s2694_s1, 128, %s39_s22, [#allocation6]  }
   0xf   :  { %s2516_s26 = smov [#allocation8]   ;;  %s2517_s28 = smov [#allocation11]  }
  0x10   :  { %s61_s27 = sshll.u32 %s2516_s26, 4  ;;  %s89_s29 = sshll.u32 %s2517_s28, 4  ;;  %s62_s27 = int_to_ptr.vmem [resolvable:$true] %s61_s27  ;;  %s90_s29 = int_to_ptr.vmem [resolvable:$true] %s89_s29 }
  0x11   :  { %s2373_s30 = scalar_lea.vmem %s62_s27, 1024  ;;  %p2378_p6 = scmp.lt.s32.totalorder %s62_s27, %s62_s27 }
  0x12   :  { %p2374_p5 = scmp.ne.s32.totalorder %s62_s27, %s2373_s30  ;;  %p2379_p7 = scmp.lt.s32.totalorder %s2373_s30, %s2373_s30 }
  0x14   :  { %p2380_p8 = por %p2379_p7, %p2378_p6 }
  0x16   :  { %p2381_p9 = pnand %p2380_p8, %p2374_p5 }
  0x18   :  { %2384 = shalt.err (!%p2381_p9)
}
  0x19   :  { %s2518_s13 = smov 64   ;;  %s2519_s14 = smov 4  }
  0x1a   :  { %67 = dma.hbm_to_vmem [thread:$0]  %s2697_s4, 1024, %s62_s27, [#allocation9], %s2518_s13, %s2518_s13, %s2519_s14  }
  0x1b   :  { %s2393_s1 = scalar_lea.vmem %s90_s29, 1024  ;;  %p2398_p11 = scmp.lt.s32.totalorder %s90_s29, %s90_s29 }
  0x1c   :  { %p2394_p10 = scmp.ne.s32.totalorder %s90_s29, %s2393_s1  ;;  %p2399_p12 = scmp.lt.s32.totalorder %s2393_s1, %s2393_s1 }
  0x1e   :  { %p2400_p13 = por %p2399_p12, %p2398_p11 }
  0x20   :  { %p2401_p0 = pnand %p2400_p13, %p2394_p10 }
  0x22   :  { %2404 = shalt.err (!%p2401_p0)
}
  0x23   :  { %95 = dma.hbm_to_vmem [thread:$0]  %s2701_s8, 1024, %s90_s29, [#allocation12], %s2518_s13, %s2518_s13, %s2519_s14  }
  0x24   :  { %s2520_s19 = smov [#allocation2]   ;;  %s2521_s21 = smov [#allocation7]  }
  0x25   :  { %s28_s20 = sshll.u32 %s2520_s19, 4  ;;  %s47_s4 = sshll.u32 %s2521_s21, 4  ;;  %s29_s20 = int_to_ptr.vmem [resolvable:$true] %s28_s20  ;;  %s48_s4 = int_to_ptr.vmem [resolvable:$true] %s47_s4 }
  0x26   :  { %s2413_s22 = scalar_lea.vmem %s29_s20, 512  ;;  %p2418_p2 = scmp.lt.s32.totalorder %s29_s20, %s29_s20 }
  0x27   :  { %p2414_p1 = scmp.ne.s32.totalorder %s29_s20, %s2413_s22  ;;  %p2419_p3 = scmp.lt.s32.totalorder %s2413_s22, %s2413_s22 }
  0x29   :  { %p2420_p4 = por %p2419_p3, %p2418_p2 }
  0x2b   :  { %p2421_p5 = pnand %p2420_p4, %p2414_p1 }
  0x2d   :  { %2424 = shalt.err (!%p2421_p5)
}
  0x2e   :  { %31 = dma.hbm_to_vmem [thread:$0]  %s2693_s0, 512, %s29_s20, [#allocation3]  }
  0x2f   :  { %s2433_s25 = scalar_lea.vmem %s48_s4, 8192  ;;  %p2438_p7 = scmp.lt.s32.totalorder %s48_s4, %s48_s4 }
  0x30   :  { %p2434_p6 = scmp.ne.s32.totalorder %s48_s4, %s2433_s25  ;;  %p2439_p8 = scmp.lt.s32.totalorder %s2433_s25, %s2433_s25 }
  0x32   :  { %p2440_p9 = por %p2439_p8, %p2438_p7 }
  0x34   :  { %p2441_p10 = pnand %p2440_p9, %p2434_p6 }
  0x36   :  { %2444 = shalt.err (!%p2441_p10)
}
  0x37   :  { %53 = dma.hbm_to_vmem [thread:$0]  %s2695_s2, 8192, %s48_s4, [#allocation6], %s2518_s13, %s2518_s13, %s2519_s14  }
  0x38   :  { %s2522_s27 = smov [#allocation10]   ;;  %s2523_s29 = smov [#allocation13]  }
  0x39   :  { %s75_s28 = sshll.u32 %s2522_s27, 4  ;;  %s103_s0 = sshll.u32 %s2523_s29, 4  ;;  %s76_s28 = int_to_ptr.vmem [resolvable:$true] %s75_s28  ;;  %s104_s0 = int_to_ptr.vmem [resolvable:$true] %s103_s0 }
  0x3a   :  { %s2453_s30 = scalar_lea.vmem %s76_s28, 1024  ;;  %p2458_p12 = scmp.lt.s32.totalorder %s76_s28, %s76_s28 }
  0x3b   :  { %p2454_p11 = scmp.ne.s32.totalorder %s76_s28, %s2453_s30  ;;  %p2459_p13 = scmp.lt.s32.totalorder %s2453_s30, %s2453_s30 }
  0x3d   :  { %p2460_p0 = por %p2459_p13, %p2458_p12 }
  0x3f   :  { %p2461_p1 = pnand %p2460_p0, %p2454_p11 }
  0x41   :  { %2464 = shalt.err (!%p2461_p1)
}
  0x42   :  { %81 = dma.hbm_to_vmem [thread:$0]  %s2699_s6, 1024, %s76_s28, [#allocation9], %s2518_s13, %s2518_s13, %s2519_s14  }
  0x43   :  { %s2473_s2 = scalar_lea.vmem %s104_s0, 8192  ;;  %p2478_p3 = scmp.lt.s32.totalorder %s104_s0, %s104_s0 }
  0x44   :  { %p2474_p2 = scmp.ne.s32.totalorder %s104_s0, %s2473_s2  ;;  %p2479_p4 = scmp.lt.s32.totalorder %s2473_s2, %s2473_s2 }
  0x46   :  { %p2480_p5 = por %p2479_p4, %p2478_p3 }
  0x48   :  { %p2481_p6 = pnand %p2480_p5, %p2474_p2 }
  0x4a   :  { %2484 = shalt.err (!%p2481_p6)
}
  0x4b   :  { %s2524_s1 = smov 512   ;;  %s2525_s17 = smov 32  }
  0x4c   :  { %109 = dma.hbm_to_vmem [thread:$0]  %s2703_s10, 8192, %s104_s0, [#allocation12], %s2524_s1, %s2524_s1, %s2525_s17  }
  0x4d   :  { %2505 = dma.done.wait [#allocation3], 512  }
  0x4e   :  { %2506 = vsyncadd [#allocation3], 4294966784 }
  0x4f   :  { %2507 = dma.done.wait [#allocation6], 8320  }
  0x50   :  { %2508 = vsyncadd [#allocation6], 4294958976 }
  0x51   :  { %2509 = dma.done.wait [#allocation9], 2048  }
  0x52   :  { %2510 = vsyncadd [#allocation9], 4294965248 }
  0x53   :  { %2511 = dma.done.wait [#allocation12], 9216  }
  0x54   :  { %2512 = vsyncadd [#allocation12], 4294958080  ;;  %v2215_v0 = vld [vmem:[#allocation7 + $0x78] sm:$0xff]   ;;  %v2219_v4 = vld [vmem:[#allocation7 + $0x70] sm:$0xff]   ;;  %vm2527_vm0 = vmmov 0  }
  0x55   :  { %v2216_v1 = vld [vmem:[#allocation7 + $0xf8] sm:$0xff]   ;;  %2025 = vmatprep.subr.bf16.mxu0 %v2215_v0  ;;  %v2220_v5 = vld [vmem:[#allocation7 + $0xf0] sm:$0xff]   ;;  %v2223_v8 = vld [vmem:[#allocation7 + $0x68] sm:$0xff]  }
  0x56   :  { %v2217_v2 = vld [vmem:[#allocation7 + $0x38] sm:$0xff]   ;;  %2047 = vmatprep.subr.bf16.mxu1 %v2216_v1  ;;  %v2221_v6 = vld [vmem:[#allocation7 + $0x30] sm:$0xff]   ;;  %v2224_v9 = vld [vmem:[#allocation7 + $0xe8] sm:$0xff]  }
  0x57   :  { %v2218_v3 = vld [vmem:[#allocation7 + $0xb8] sm:$0xff]   ;;  %2026 = vmatpush3.bf16.msra.mxu0 %v2217_v2  ;;  %v2222_v7 = vld [vmem:[#allocation7 + $0xb0] sm:$0xff]   ;;  %v2225_v10 = vld [vmem:[#allocation7 + $0x28] sm:$0xff]  }
  0x58   :  { %2048 = vmatpush3.bf16.msra.mxu1 %v2218_v3  ;;  %2027 = vmatprep.subr.bf16.mxu0 %v2219_v4  ;;  %v2226_v11 = vld [vmem:[#allocation7 + $0xa8] sm:$0xff]   ;;  %v2227_v12 = vld [vmem:[#allocation7 + $0x60] sm:$0xff]   ;;  %v2231_v16 = vld [vmem:[#allocation7 + $0x58] sm:$0xff]  }
  0x59   :  { %2049 = vmatprep.subr.bf16.mxu1 %v2220_v5  ;;  %v2228_v13 = vld [vmem:[#allocation7 + $0xe0] sm:$0xff]   ;;  %v2232_v17 = vld [vmem:[#allocation7 + $0xd8] sm:$0xff]   ;;  %v2235_v20 = vld [vmem:[#allocation7 + $0x50] sm:$0xff]  }
  0x5a   :  { %v2229_v14 = vld [vmem:[#allocation7 + $0x20] sm:$0xff]   ;;  %v2233_v18 = vld [vmem:[#allocation7 + $0x18] sm:$0xff]   ;;  %v2236_v21 = vld [vmem:[#allocation7 + $0xd0] sm:$0xff]  }
  0x5b   :  { %2028 = vmatpush3.bf16.msra.mxu0 %v2221_v6  ;;  %v2230_v15 = vld [vmem:[#allocation7 + $0xa0] sm:$0xff]   ;;  %v2234_v19 = vld [vmem:[#allocation7 + $0x98] sm:$0xff]   ;;  %v2237_v22 = vld [vmem:[#allocation7 + $0x10] sm:$0xff]  }
  0x5c   :  { %2050 = vmatpush3.bf16.msra.mxu1 %v2222_v7  ;;  %2029 = vmatprep.subr.bf16.mxu0 %v2223_v8  ;;  %v2238_v23 = vld [vmem:[#allocation7 + $0x90] sm:$0xff]   ;;  %v2239_v24 = vld [vmem:[#allocation7 + $0x48] sm:$0xff]   ;;  %v2243_v28 = vld [vmem:[#allocation7 + $0x40] sm:$0xff]  }
  0x5d   :  { %2051 = vmatprep.subr.bf16.mxu1 %v2224_v9  ;;  %v2240_v25 = vld [vmem:[#allocation7 + $0xc8] sm:$0xff]   ;;  %v2244_v29 = vld [vmem:[#allocation7 + $0xc0] sm:$0xff]   ;;  %v134_v32 = vld [vmem:[#allocation2] sm:$0xff] }
  0x5e   :  { %v2241_v26 = vld [vmem:[#allocation7 + $0x8] sm:$0xff]   ;;  %v2245_v30 = vld [vmem:[#allocation7] sm:$0xff]   ;;  %v1854_v34 = vcombine.low %v134_v32, %v134_v32  ;;  %v1855_v35 = vcombine.high %v134_v32, %v134_v32  ;;  %v2251_v38 = vld [vmem:[#allocation7 + $0x178] sm:$0xff]  }
  0x5f   :  { %2030 = vmatpush3.bf16.msra.mxu0 %v2225_v10  ;;  %v2242_v27 = vld [vmem:[#allocation7 + $0x88] sm:$0xff]   ;;  %v2246_v31 = vld [vmem:[#allocation7 + $0x80] sm:$0xff]   ;;  %v2252_v39 = vld [vmem:[#allocation7 + $0x1f8] sm:$0xff]  }
  0x60   :  { %2052 = vmatpush3.bf16.msra.mxu1 %v2226_v11  ;;  %2031 = vmatprep.subr.bf16.mxu0 %v2227_v12  ;;  %v135_v33 = vld [vmem:[#allocation2 + $0x8] sm:$0xff]  ;;  %v2253_v40 = vld [vmem:[#allocation7 + $0x138] sm:$0xff]   ;;  %v2255_v42 = vld [vmem:[#allocation7 + $0x170] sm:$0xff]  }
  0x61   :  { %2053 = vmatprep.subr.bf16.mxu1 %v2228_v13  ;;  %v1856_v36 = vcombine.low %v135_v33, %v135_v33  ;;  %v1857_v37 = vcombine.high %v135_v33, %v135_v33  ;;  %717 = vmatprep.mubr.bf16.mxu0 %v1855_v35  ;;  %v2254_v41 = vld [vmem:[#allocation7 + $0x1b8] sm:$0xff]   ;;  %v2256_v43 = vld [vmem:[#allocation7 + $0x1f0] sm:$0xff]   ;;  %v2259_v46 = vld [vmem:[#allocation7 + $0x168] sm:$0xff]  }
  0x62   :  { %v2257_v44 = vld [vmem:[#allocation7 + $0x130] sm:$0xff]   ;;  %v2260_v47 = vld [vmem:[#allocation7 + $0x1e8] sm:$0xff]   ;;  %v2263_v50 = vld [vmem:[#allocation7 + $0x160] sm:$0xff]  }
  0x63   :  { %2032 = vmatpush3.bf16.msra.mxu0 %v2229_v14  ;;  %757 = vmatprep.mubr.bf16.mxu1 %v1857_v37  ;;  %v2258_v45 = vld [vmem:[#allocation7 + $0x1b0] sm:$0xff]   ;;  %v2261_v48 = vld [vmem:[#allocation7 + $0x128] sm:$0xff]   ;;  %v2264_v51 = vld [vmem:[#allocation7 + $0x1e0] sm:$0xff]   ;;  %v2526_v14 = vmov 0.0  }
  0x64   :  { %2054 = vmatpush3.bf16.msra.mxu1 %v2230_v15  ;;  %2033 = vmatprep.subr.bf16.mxu0 %v2231_v16  ;;  %v2262_v49 = vld [vmem:[#allocation7 + $0x1a8] sm:$0xff]   ;;  %v2265_v52 = vld [vmem:[#allocation7 + $0x120] sm:$0xff]   ;;  %v2267_v54 = vld [vmem:[#allocation7 + $0x158] sm:$0xff]  }
  0x65   :  { %2055 = vmatprep.subr.bf16.mxu1 %v2232_v17  ;;  %v2266_v53 = vld [vmem:[#allocation7 + $0x1a0] sm:$0xff]   ;;  %v2268_v55 = vld [vmem:[#allocation7 + $0x1d8] sm:$0xff]   ;;  %v2271_v58 = vld [vmem:[#allocation7 + $0x150] sm:$0xff]  }
  0x66   :  { %v2269_v56 = vld [vmem:[#allocation7 + $0x118] sm:$0xff]   ;;  %v2272_v59 = vld [vmem:[#allocation7 + $0x1d0] sm:$0xff]   ;;  %v2275_v62 = vld [vmem:[#allocation7 + $0x148] sm:$0xff]  }
  0x67   :  { %2034 = vmatpush3.bf16.msra.mxu0 %v2233_v18  ;;  %v2270_v57 = vld [vmem:[#allocation7 + $0x198] sm:$0xff]   ;;  %v2273_v60 = vld [vmem:[#allocation7 + $0x110] sm:$0xff]   ;;  %v2276_v63 = vld [vmem:[#allocation7 + $0x1c8] sm:$0xff]  }
  0x68   :  { %2056 = vmatpush3.bf16.msra.mxu1 %v2234_v19  ;;  %2035 = vmatprep.subr.bf16.mxu0 %v2235_v20  ;;  %v2274_v61 = vld [vmem:[#allocation7 + $0x190] sm:$0xff]   ;;  %v2277_v0 = vld [vmem:[#allocation7 + $0x108] sm:$0xff]   ;;  %v2279_v2 = vld [vmem:[#allocation7 + $0x140] sm:$0xff]  }
  0x69   :  { %2057 = vmatprep.subr.bf16.mxu1 %v2236_v21  ;;  %v2278_v1 = vld [vmem:[#allocation7 + $0x188] sm:$0xff]   ;;  %v2280_v3 = vld [vmem:[#allocation7 + $0x1c0] sm:$0xff]   ;;  %v137_v9 = vld [vmem:[#allocation2 + $0x18] sm:$0xff] }
  0x6a   :  { %v2281_v4 = vld [vmem:[#allocation7 + $0x100] sm:$0xff]   ;;  %v136_v6 = vld [vmem:[#allocation2 + $0x10] sm:$0xff]  ;;  %v1860_v10 = vcombine.low %v137_v9, %v137_v9  ;;  %v1861_v11 = vcombine.high %v137_v9, %v137_v9  ;;  %v2287_v12 = vld [vmem:[#allocation8 + $0x38] sm:$0xff]  }
  0x6b   :  { %2036 = vmatpush3.bf16.msra.mxu0 %v2237_v22  ;;  %v2282_v5 = vld [vmem:[#allocation7 + $0x180] sm:$0xff]   ;;  %v1858_v7 = vcombine.low %v136_v6, %v136_v6  ;;  %v1859_v8 = vcombine.high %v136_v6, %v136_v6  ;;  %v2288_v13 = vld [vmem:[#allocation10 + $0x38] sm:$0xff]   ;;  %v2289_v15 = vld [vmem:[#allocation8 + $0x30] sm:$0xff]  }
  0x6c   :  { %2058 = vmatpush3.bf16.msra.mxu1 %v2238_v23  ;;  %2037 = vmatprep.subr.bf16.mxu0 %v2239_v24  ;;  %v2290_v16 = vld [vmem:[#allocation10 + $0x30] sm:$0xff]   ;;  %v2291_v17 = vld [vmem:[#allocation8 + $0x28] sm:$0xff]   ;;  %v2293_v19 = vld [vmem:[#allocation8 + $0x20] sm:$0xff]  }
  0x6d   :  { %2059 = vmatprep.subr.bf16.mxu1 %v2240_v25  ;;  %v2292_v18 = vld [vmem:[#allocation10 + $0x28] sm:$0xff]   ;;  %v2294_v20 = vld [vmem:[#allocation10 + $0x20] sm:$0xff]   ;;  %v2295_v21 = vld [vmem:[#allocation8 + $0x18] sm:$0xff]  }
  0x6e   :  { %v2296_v22 = vld [vmem:[#allocation10 + $0x18] sm:$0xff]   ;;  %v2297_v23 = vld [vmem:[#allocation8 + $0x10] sm:$0xff]   ;;  %v2299_v25 = vld [vmem:[#allocation8 + $0x8] sm:$0xff]  }
  0x6f   :  { %2038 = vmatpush3.bf16.msra.mxu0 %v2241_v26  ;;  %v2298_v24 = vld [vmem:[#allocation10 + $0x10] sm:$0xff]   ;;  %v2300_v26 = vld [vmem:[#allocation10 + $0x8] sm:$0xff]   ;;  %v1237_v6 = vld [vmem:[#allocation13 + $0x180] sm:$0xff] }
  0x70   :  { %2060 = vmatpush3.bf16.msra.mxu1 %v2242_v27  ;;  %2039 = vmatprep.subr.bf16.mxu0 %v2243_v28  ;;  %v2301_v27 = vld [vmem:[#allocation8] sm:$0xff]  }
  0x71   :  { %2061 = vmatprep.subr.bf16.mxu1 %v2244_v29  ;;  %v2302_v28 = vld [vmem:[#allocation10] sm:$0xff]  }
  0x73   :  { %2040 = vmatpush3.bf16.msra.mxu0 %v2245_v30 }
  0x74   :  { %2062 = vmatpush3.bf16.msra.mxu1 %v2246_v31  ;;  %2069 = vmatprep.subr.bf16.mxu0 %v2251_v38  ;;  %v1853_v38 = vld [vmem:[%s2696_s3] ss:$0 sm:$0xff] }
  0x75   :  { %2091 = vmatprep.subr.bf16.mxu1 %v2252_v39 }
  0x76   :  { %718 = vmatmul.mubr.bf16.vlgmr.msra.gmra.mxu0 %v1854_v34 }
  0x77   :  { %758 = vmatmul.mubr.bf16.vlgmr.msra.gmra.mxu1 %v1856_v36  ;;  %2070 = vmatpush3.bf16.msra.mxu0 %v2253_v40 }
  0x78   :  { %2092 = vmatpush3.bf16.msra.mxu1 %v2254_v41  ;;  %2071 = vmatprep.subr.bf16.mxu0 %v2255_v42 }
  0x79   :  { %2093 = vmatprep.subr.bf16.mxu1 %v2256_v43  ;;  %797 = vmatprep.mubr.bf16.mxu0 %v1859_v8 }
  0x7a   :  { %837 = vmatprep.mubr.bf16.mxu1 %v1861_v11 }
  0x7b   :  { %2072 = vmatpush3.bf16.msra.mxu0 %v2257_v44 }
  0x7c   :  { %2094 = vmatpush3.bf16.msra.mxu1 %v2258_v45  ;;  %2073 = vmatprep.subr.bf16.mxu0 %v2259_v46 }
  0x7d   :  { %2095 = vmatprep.subr.bf16.mxu1 %v2260_v47 }
  0x7f   :  { %2074 = vmatpush3.bf16.msra.mxu0 %v2261_v48 }
  0x80   :  { %2096 = vmatpush3.bf16.msra.mxu1 %v2262_v49  ;;  %2075 = vmatprep.subr.bf16.mxu0 %v2263_v50 }
  0x81   :  { %2097 = vmatprep.subr.bf16.mxu1 %v2264_v51 }
  0x83   :  { %2076 = vmatpush3.bf16.msra.mxu0 %v2265_v52 }
  0x84   :  { %2098 = vmatpush3.bf16.msra.mxu1 %v2266_v53  ;;  %2077 = vmatprep.subr.bf16.mxu0 %v2267_v54 }
  0x85   :  { %2099 = vmatprep.subr.bf16.mxu1 %v2268_v55  ;;  %v2303_v55 = vld [vmem:[#allocation11 + $0x38] sm:$0xff]  }
  0x87   :  { %2078 = vmatpush3.bf16.msra.mxu0 %v2269_v56 }
  0x88   :  { %2100 = vmatpush3.bf16.msra.mxu1 %v2270_v57  ;;  %2079 = vmatprep.subr.bf16.mxu0 %v2271_v58  ;;  %v2304_v57 = vld [vmem:[#allocation11 + $0x30] sm:$0xff]   ;;  %v2305_v58 = vld [vmem:[#allocation11 + $0x28] sm:$0xff]  }
  0x89   :  { %2101 = vmatprep.subr.bf16.mxu1 %v2272_v59  ;;  %v2306_v59 = vld [vmem:[#allocation11 + $0x20] sm:$0xff]  }
  0x8b   :  { %2080 = vmatpush3.bf16.msra.mxu0 %v2273_v60  ;;  %v2307_v60 = vld [vmem:[#allocation11 + $0x18] sm:$0xff]  }
  0x8c   :  { %2102 = vmatpush3.bf16.msra.mxu1 %v2274_v61  ;;  %2081 = vmatprep.subr.bf16.mxu0 %v2275_v62  ;;  %v2308_v61 = vld [vmem:[#allocation11 + $0x10] sm:$0xff]   ;;  %v2309_v62 = vld [vmem:[#allocation11 + $0x8] sm:$0xff]  }
  0x8d   :  { %2103 = vmatprep.subr.bf16.mxu1 %v2276_v63  ;;  %v2310_v63 = vld [vmem:[#allocation11] sm:$0xff]  }
  0x8f   :  { %2082 = vmatpush3.bf16.msra.mxu0 %v2277_v0  ;;  %v1245_v0 = vld [vmem:[#allocation13 + $0x1c0] sm:$0xff] }
  0x90   :  { %2104 = vmatpush3.bf16.msra.mxu1 %v2278_v1  ;;  %2083 = vmatprep.subr.bf16.mxu0 %v2279_v2  ;;  %v1249_v1 = vld [vmem:[#allocation13 + $0x1e0] sm:$0xff]  ;;  %v2661_v2 = vld [vmem:[#allocation13 + $0x1c8] sm:$0xff] }
  0x91   :  { %2105 = vmatprep.subr.bf16.mxu1 %v2280_v3  ;;  %v2009_v3 = vcombine.low %v1245_v0, %v1249_v1 }
  0x93   :  { %2084 = vmatpush3.bf16.msra.mxu0 %v2281_v4  ;;  %v2010_v4 = vcombine.high %v1245_v0, %v1249_v1 }
  0x94   :  { %2106 = vmatpush3.bf16.msra.mxu1 %v2282_v5  ;;  %2140 = vmatprep.subr.bf16.mxu0 %v2526_v14  ;;  %v2663_v5 = vld [vmem:[#allocation13 + $0x1e8] sm:$0xff] }
  0x95   :  { %2160 = vmatprep.subr.bf16.mxu1 %v2526_v14  ;;  %v2011_v8 = vcombine.low %v2661_v2, %v2663_v5  ;;  %v2012_v9 = vcombine.high %v2661_v2, %v2663_v5 }
  0x96   :  { %798 = vmatmul.mubr.bf16.vlgmr.msra.gmra.mxu0 %v1858_v7  ;;  %v1241_v7 = vld [vmem:[#allocation13 + $0x1a0] sm:$0xff] }
  0x97   :  { %838 = vmatmul.mubr.bf16.vlgmr.msra.gmra.mxu1 %v1860_v10  ;;  %2141 = vmatpush3.bf16.msra.mxu0 %v2287_v12  ;;  %v2002_v10 = vcombine.high %v1237_v6, %v1241_v7  ;;  %v2001_v11 = vcombine.low %v1237_v6, %v1241_v7  ;;  %v1229_v12 = vld [vmem:[#allocation13 + $0x140] sm:$0xff]  ;;  %v1198_v6 = vld [vmem:[#allocation13 + $0x48] sm:$0xff] }
  0x98   :  { %2161 = vmatpush3.bf16.msra.mxu1 %v2288_v13  ;;  %2142 = vmatprep.subr.bf16.mxu0 %v2526_v14  ;;  %v1233_v13 = vld [vmem:[#allocation13 + $0x160] sm:$0xff]  ;;  %v1202_v7 = vld [vmem:[#allocation13 + $0x68] sm:$0xff] }
  0x99   :  { %2162 = vmatprep.subr.bf16.mxu1 %v2526_v14  ;;  %2156 = vmatprep.mubr.msk.bf16.mxu0 %vm2527_vm0, %v2526_v14 }
  0x9a   :  { %2176 = vmatprep.mubr.msk.bf16.mxu1 %vm2527_vm0, %v2526_v14 }
  0x9b   :  { %2143 = vmatpush3.bf16.msra.mxu0 %v2289_v15  ;;  %v1993_v15 = vcombine.low %v1229_v12, %v1233_v13 }
  0x9c   :  { %2163 = vmatpush3.bf16.msra.mxu1 %v2290_v16  ;;  %2144 = vmatprep.subr.bf16.mxu0 %v2526_v14  ;;  %v1221_v16 = vld [vmem:[#allocation13 + $0x100] sm:$0xff] }
  0x9d   :  { %2164 = vmatprep.subr.bf16.mxu1 %v2526_v14 }
  0x9f   :  { %2145 = vmatpush3.bf16.msra.mxu0 %v2291_v17  ;;  %v1225_v17 = vld [vmem:[#allocation13 + $0x120] sm:$0xff] }
  0xa0   :  { %2165 = vmatpush3.bf16.msra.mxu1 %v2292_v18  ;;  %2146 = vmatprep.subr.bf16.mxu0 %v2526_v14  ;;  %v1986_v18 = vcombine.high %v1221_v16, %v1225_v17 }
  0xa1   :  { %2166 = vmatprep.subr.bf16.mxu1 %v2526_v14 }
  0xa3   :  { %2147 = vmatpush3.bf16.msra.mxu0 %v2293_v19  ;;  %v1985_v19 = vcombine.low %v1221_v16, %v1225_v17 }
  0xa4   :  { %2167 = vmatpush3.bf16.msra.mxu1 %v2294_v20  ;;  %2148 = vmatprep.subr.bf16.mxu0 %v2526_v14  ;;  %v1213_v20 = vld [vmem:[#allocation13 + $0xc0] sm:$0xff] }
  0xa5   :  { %2168 = vmatprep.subr.bf16.mxu1 %v2526_v14 }
  0xa7   :  { %2149 = vmatpush3.bf16.msra.mxu0 %v2295_v21  ;;  %v1217_v21 = vld [vmem:[#allocation13 + $0xe0] sm:$0xff] }
  0xa8   :  { %2169 = vmatpush3.bf16.msra.mxu1 %v2296_v22  ;;  %2150 = vmatprep.subr.bf16.mxu0 %v2526_v14  ;;  %v1978_v22 = vcombine.high %v1213_v20, %v1217_v21 }
  0xa9   :  { %2170 = vmatprep.subr.bf16.mxu1 %v2526_v14 }
  0xab   :  { %2151 = vmatpush3.bf16.msra.mxu0 %v2297_v23  ;;  %v1977_v23 = vcombine.low %v1213_v20, %v1217_v21  ;;  %v1251_v20 = vld [vmem:[#allocation13 + $0x1f0] sm:$0xff]  ;;  %v1248_v21 = vld [vmem:[#allocation13 + $0x1d8] sm:$0xff] }
  0xac   :  { %2171 = vmatpush3.bf16.msra.mxu1 %v2298_v24  ;;  %2152 = vmatprep.subr.bf16.mxu0 %v2526_v14  ;;  %v1205_v24 = vld [vmem:[#allocation13 + $0x80] sm:$0xff] }
  0xad   :  { %2172 = vmatprep.subr.bf16.mxu1 %v2526_v14 }
  0xaf   :  { %2153 = vmatpush3.bf16.msra.mxu0 %v2299_v25  ;;  %v1209_v25 = vld [vmem:[#allocation13 + $0xa0] sm:$0xff] }
  0xb0   :  { %2173 = vmatpush3.bf16.msra.mxu1 %v2300_v26  ;;  %2154 = vmatprep.subr.bf16.mxu0 %v2526_v14  ;;  %v1970_v26 = vcombine.high %v1205_v24, %v1209_v25 }
  0xb1   :  { %2174 = vmatprep.subr.bf16.mxu1 %v2526_v14 }
  0xb3   :  { %2155 = vmatpush3.bf16.msra.mxu0 %v2301_v27  ;;  %v1969_v27 = vcombine.low %v1205_v24, %v1209_v25 }
  0xb4   :  { %2175 = vmatpush3.bf16.msra.mxu1 %v2302_v28  ;;  %2180 = vmatprep.subr.bf16.mxu0 %v2526_v14  ;;  %v1197_v28 = vld [vmem:[#allocation13 + $0x40] sm:$0xff] }
  0xb5   :  { %1615 = vmatprep.subr.bf16.mxu1 %v2010_v4  ;;  %v1210_v4 = vld [vmem:[#allocation13 + $0xa8] sm:$0xff] }
 0x136   :  { %v2041_v29 = vpop.f32.mrf.mxu0 }
 0x137   :  { %v2063_v30 = vpop.f32.mrf.mxu1 }
 0x138   :  { %v2042_v31 = vpop.f32.mrf.mxu0 }
 0x139   :  { %v2064_v32 = vpop.f32.mrf.mxu1  ;;  %v2043_v37 = vadd.f32 %v2042_v31, %v2041_v29  ;;  %v1201_v29 = vld [vmem:[#allocation13 + $0x60] sm:$0xff] }
 0x13a   :  { %v2044_v33 = vpop.f32.mrf.mxu0  ;;  %v2065_v40 = vadd.f32 %v2064_v32, %v2063_v30  ;;  %v1962_v30 = vcombine.high %v1197_v28, %v1201_v29  ;;  %v1961_v31 = vcombine.low %v1197_v28, %v1201_v29  ;;  %v1935_v32 = vld [vmem:[%s2700_s7] ss:$0 sm:$0xff] }
 0x13b   :  { %v2066_v34 = vpop.f32.mrf.mxu1  ;;  %v720_v39 = vadd.f32 %v2043_v37, %v1853_v38  ;;  %v1944_v28 = vld [vmem:[%s2702_s9] ss:$0 sm:$0xff] }
 0x13c   :  { %v2045_v35 = vpop.f32.mrf.mxu0 }
 0x13d   :  { %v2067_v36 = vpop.f32.mrf.mxu1  ;;  %v760_v45 = vadd.f32 %v2065_v40, %v720_v39 }
 0x156   :  { %v2085_v41 = vpop.f32.mrf.mxu0 }
 0x157   :  { %v2107_v42 = vpop.f32.mrf.mxu1 }
 0x158   :  { %v2086_v43 = vpop.f32.mrf.mxu0 }
 0x159   :  { %v2108_v44 = vpop.f32.mrf.mxu1  ;;  %v2087_v46 = vadd.f32 %v2086_v43, %v2085_v41 }
 0x15a   :  { %v2088_v47 = vpop.f32.mrf.mxu0  ;;  %v2109_v50 = vadd.f32 %v2108_v44, %v2107_v42  ;;  %v1926_v44 = vld [vmem:[%s2698_s5] ss:$0 sm:$0xff] }
 0x15b   :  { %v2110_v48 = vpop.f32.mrf.mxu1  ;;  %v800_v49 = vadd.f32 %v2087_v46, %v760_v45  ;;  %v1072_v45 = vld [vmem:[#allocation5] sm:$0xff] }
 0x15c   :  { %v2089_v51 = vpop.f32.mrf.mxu0 }
 0x15d   :  { %v2111_v52 = vpop.f32.mrf.mxu1  ;;  %v840_v53 = vadd.f32 %v2109_v50, %v800_v49  ;;  %v1238_v49 = vld [vmem:[#allocation13 + $0x188] sm:$0xff] }
 0x15e   :  { %v1242_v50 = vld [vmem:[#allocation13 + $0x1a8] sm:$0xff] }
 0x15f   :  { %v845_v54 = vmax.f32 %v840_v53, 0.0  ;;  %v2004_v53 = vcombine.high %v1238_v49, %v1242_v50 }
 0x161   :  { %v846_v56 = vpack.c.bf16 %v845_v54, %v845_v54  ;;  %v1230_v54 = vld [vmem:[#allocation13 + $0x148] sm:$0xff] }
 0x163   :  { %2157 = vmatmul.mubr.bf16.vlgmr.msra.gmra.mxu0 %v846_v56  ;;  %2177 = vmatmul.mubr.bf16.vlgmr.msra.gmra.mxu1 %v846_v56  ;;  %v2003_v56 = vcombine.low %v1238_v49, %v1242_v50  ;;  %v1223_v50 = vld [vmem:[#allocation13 + $0x110] sm:$0xff] }
 0x164   :  { %2181 = vmatpush3.bf16.msra.mxu0 %v2303_v55  ;;  %2196 = vmatprep.mubr.msk.bf16.mxu0 %vm2527_vm0, %v2526_v14  ;;  %v1234_v55 = vld [vmem:[#allocation13 + $0x168] sm:$0xff] }
 0x165   :  { %2182 = vmatprep.subr.bf16.mxu0 %v2526_v14  ;;  %1616 = vmatpush1.bf16.msra.mxu1 %v2009_v3  ;;  %v1206_v3 = vld [vmem:[#allocation13 + $0x88] sm:$0xff] }
 0x166   :  { %1617 = vmatprep.subr.bf16.mxu1 %v2002_v10  ;;  %v1972_v5 = vcombine.high %v1206_v3, %v1210_v4  ;;  %v1963_v10 = vcombine.low %v1198_v6, %v1202_v7 }
 0x168   :  { %2183 = vmatpush3.bf16.msra.mxu0 %v2304_v57  ;;  %v1996_v57 = vcombine.high %v1230_v54, %v1234_v55 }
 0x169   :  { %2184 = vmatprep.subr.bf16.mxu0 %v2526_v14  ;;  %1618 = vmatpush1.bf16.msra.mxu1 %v2001_v11  ;;  %v1189_v11 = vld [vmem:[#allocation13] sm:$0xff] }
 0x16c   :  { %2185 = vmatpush3.bf16.msra.mxu0 %v2305_v58  ;;  %v1222_v58 = vld [vmem:[#allocation13 + $0x108] sm:$0xff] }
 0x16d   :  { %2186 = vmatprep.subr.bf16.mxu0 %v2526_v14 }
 0x170   :  { %2187 = vmatpush3.bf16.msra.mxu0 %v2306_v59  ;;  %v1226_v59 = vld [vmem:[#allocation13 + $0x128] sm:$0xff] }
 0x171   :  { %2188 = vmatprep.subr.bf16.mxu0 %v2526_v14  ;;  %v1987_v0 = vcombine.low %v1222_v58, %v1226_v59 }
 0x174   :  { %2189 = vmatpush3.bf16.msra.mxu0 %v2307_v60  ;;  %v1995_v60 = vcombine.low %v1230_v54, %v1234_v55 }
 0x175   :  { %2190 = vmatprep.subr.bf16.mxu0 %v2526_v14 }
 0x178   :  { %2191 = vmatpush3.bf16.msra.mxu0 %v2308_v61  ;;  %v1988_v61 = vcombine.high %v1222_v58, %v1226_v59  ;;  %v1215_v58 = vld [vmem:[#allocation13 + $0xd0] sm:$0xff] }
 0x179   :  { %2192 = vmatprep.subr.bf16.mxu0 %v2526_v14  ;;  %v1219_v59 = vld [vmem:[#allocation13 + $0xf0] sm:$0xff] }
 0x17c   :  { %2193 = vmatpush3.bf16.msra.mxu0 %v2309_v62  ;;  %v1214_v62 = vld [vmem:[#allocation13 + $0xc8] sm:$0xff] }
 0x17d   :  { %2194 = vmatprep.subr.bf16.mxu0 %v2526_v14  ;;  %v1994_v14 = vcombine.high %v1229_v12, %v1233_v13  ;;  %v1193_v12 = vld [vmem:[#allocation13 + $0x20] sm:$0xff]  ;;  %v1190_v13 = vld [vmem:[#allocation13 + $0x8] sm:$0xff] }
 0x17e   :  { %v1953_v16 = vcombine.low %v1189_v11, %v1193_v12 }
 0x17f   :  { %1619 = vmatprep.subr.bf16.mxu1 %v1994_v14  ;;  %v1954_v14 = vcombine.high %v1189_v11, %v1193_v12  ;;  %v1203_v11 = vld [vmem:[#allocation13 + $0x70] sm:$0xff]  ;;  %v1200_v12 = vld [vmem:[#allocation13 + $0x58] sm:$0xff] }
 0x180   :  { %2195 = vmatpush3.bf16.msra.mxu0 %v2310_v63  ;;  %1620 = vmatpush1.bf16.msra.mxu1 %v1993_v15  ;;  %v1218_v63 = vld [vmem:[#allocation13 + $0xe8] sm:$0xff] }
 0x181   :  { %1656 = vmatprep.subr.bf16.mxu0 %v2012_v9  ;;  %1621 = vmatprep.subr.bf16.mxu1 %v1986_v18  ;;  %v1980_v1 = vcombine.high %v1214_v62, %v1218_v63  ;;  %v1979_v2 = vcombine.low %v1214_v62, %v1218_v63  ;;  %v1964_v9 = vcombine.high %v1198_v6, %v1202_v7  ;;  %v1194_v15 = vld [vmem:[#allocation13 + $0x28] sm:$0xff] }
 0x182   :  { %v1955_v17 = vcombine.low %v1190_v13, %v1194_v15  ;;  %v1956_v18 = vcombine.high %v1190_v13, %v1194_v15  ;;  %v1981_v6 = vcombine.low %v1215_v58, %v1219_v59  ;;  %v1204_v13 = vld [vmem:[#allocation13 + $0x78] sm:$0xff] }
 0x184   :  { %1622 = vmatpush1.bf16.msra.mxu1 %v1985_v19  ;;  %v1247_v19 = vld [vmem:[#allocation13 + $0x1d0] sm:$0xff] }
 0x185   :  { %1623 = vmatprep.subr.bf16.mxu1 %v1978_v22  ;;  %v2014_v22 = vcombine.high %v1247_v19, %v1251_v20  ;;  %v2013_v24 = vcombine.low %v1247_v19, %v1251_v20  ;;  %v1195_v19 = vld [vmem:[#allocation13 + $0x30] sm:$0xff]  ;;  %v1192_v20 = vld [vmem:[#allocation13 + $0x18] sm:$0xff] }
 0x188   :  { %1624 = vmatpush1.bf16.msra.mxu1 %v1977_v23  ;;  %v1252_v23 = vld [vmem:[#allocation13 + $0x1f8] sm:$0xff] }
 0x189   :  { %1625 = vmatprep.subr.bf16.mxu1 %v1970_v26  ;;  %v2015_v25 = vcombine.low %v1248_v21, %v1252_v23  ;;  %v2016_v26 = vcombine.high %v1248_v21, %v1252_v23  ;;  %v1196_v21 = vld [vmem:[#allocation13 + $0x38] sm:$0xff]  ;;  %v1967_v23 = vcombine.low %v1200_v12, %v1204_v13 }
 0x18c   :  { %1626 = vmatpush1.bf16.msra.mxu1 %v1969_v27  ;;  %v2528_v27 = vmov 0  }
 0x18d   :  { %1627 = vmatprep.subr.bf16.mxu1 %v1962_v30  ;;  %1647 = vmatprep.mubr.bf16.mxu1 %v2528_v27 }
 0x190   :  { %1628 = vmatpush1.bf16.msra.mxu1 %v1961_v31  ;;  %v1239_v31 = vld [vmem:[#allocation13 + $0x190] sm:$0xff] }
 0x191   :  { %1629 = vmatprep.subr.bf16.mxu1 %v1954_v14 }
 0x194   :  { %1630 = vmatpush1.bf16.msra.mxu1 %v1953_v16 }
 0x195   :  { %1697 = vmatprep.subr.bf16.mxu1 %v2014_v22 }
 0x223   :  { %v952_v33 = vpop.f32.mrf.mxu0  ;;  %v1063_v34 = vpop.f32.mrf.mxu1 }
 0x224   :  { %v1064_v35 = vadd.f32 %v1935_v32, %v1063_v34  ;;  %v953_v47 = vadd.f32 %v1926_v44, %v952_v33  ;;  %v1243_v33 = vld [vmem:[#allocation13 + $0x1b0] sm:$0xff]  ;;  %v1240_v34 = vld [vmem:[#allocation13 + $0x198] sm:$0xff] }
 0x225   :  { %v2158_v36 = vpop.f32.mrf.mxu0  ;;  %v2178_v37 = vpop.f32.mrf.mxu1  ;;  %v1232_v44 = vld [vmem:[#allocation13 + $0x158] sm:$0xff] }
 0x226   :  { %v1069_v38 = vmul.f32 0.5, %v1064_v35  ;;  %v1244_v35 = vld [vmem:[#allocation13 + $0x1b8] sm:$0xff] }
 0x227   :  { %v955_v39 = vpop.f32.mrf.mxu0  ;;  %v1066_v40 = vpop.f32.mrf.mxu1 }
 0x228   :  { %v1070_v41 = vmul.f32 1.442695, %v1069_v38  ;;  %v2006_v39 = vcombine.high %v1239_v31, %v1243_v33  ;;  %v2008_v40 = vcombine.high %v1240_v34, %v1244_v35 }
 0x229   :  { %v2159_v42 = vpop.f32.mrf.mxu0  ;;  %v2179_v43 = vpop.f32.mrf.mxu1 }
 0x22a   :  { %2311 = vpow2.f32 %v1070_v41  ;;  %v1231_v41 = vld [vmem:[#allocation13 + $0x150] sm:$0xff] }
 0x22b   :  { %v1235_v43 = vld [vmem:[#allocation13 + $0x170] sm:$0xff] }
 0x22c   :  { %v1997_v54 = vcombine.low %v1231_v41, %v1235_v43 }
 0x237   :  { %v2312_v46 = vpop.eup %2311 }
 0x238   :  { %v1073_v48 = vmul.f32 %v2312_v46, %v1072_v45  ;;  %v1236_v45 = vld [vmem:[#allocation13 + $0x178] sm:$0xff]  ;;  %v2005_v46 = vcombine.low %v1239_v31, %v1243_v33 }
 0x239   :  { %v2000_v49 = vcombine.high %v1232_v44, %v1236_v45  ;;  %v1999_v55 = vcombine.low %v1232_v44, %v1236_v45 }
 0x23a   :  { %v1074_v51 = vadd.f32 %v1073_v48, %v953_v47  ;;  %v2007_v47 = vcombine.low %v1240_v34, %v1244_v35  ;;  %v1998_v48 = vcombine.high %v1231_v41, %v1235_v43 }
 0x23c   :  { %v1075_v52 = vpack.c.bf16 %v1074_v51, %v1074_v51  ;;  %v1227_v51 = vld [vmem:[#allocation13 + $0x130] sm:$0xff] }
 0x23d   :  { %v1989_v62 = vcombine.low %v1223_v50, %v1227_v51 }
 0x23e   :  { %2197 = vmatmul.mubr.bf16.vlgmr.msra.gmra.mxu0 %v1075_v52  ;;  %v1224_v52 = vld [vmem:[#allocation13 + $0x118] sm:$0xff] }
 0x23f   :  { %1657 = vmatpush1.bf16.msra.mxu0 %v2011_v8  ;;  %v1971_v8 = vcombine.low %v1206_v3, %v1210_v4  ;;  %1688 = vmatprep.mubr.bf16.mxu0 %v2528_v27  ;;  %v1207_v3 = vld [vmem:[#allocation13 + $0x90] sm:$0xff] }
 0x240   :  { %1658 = vmatprep.subr.bf16.mxu0 %v2004_v53  ;;  %v1228_v53 = vld [vmem:[#allocation13 + $0x138] sm:$0xff]  ;;  %v1211_v4 = vld [vmem:[#allocation13 + $0xb0] sm:$0xff] }
 0x241   :  { %v1991_v63 = vcombine.low %v1224_v52, %v1228_v53  ;;  %v1973_v14 = vcombine.low %v1207_v3, %v1211_v4 }
 0x243   :  { %1659 = vmatpush1.bf16.msra.mxu0 %v2003_v56  ;;  %v1990_v56 = vcombine.high %v1223_v50, %v1227_v51 }
 0x244   :  { %1660 = vmatprep.subr.bf16.mxu0 %v1996_v57  ;;  %v1992_v57 = vcombine.high %v1224_v52, %v1228_v53 }
 0x247   :  { %1661 = vmatpush1.bf16.msra.mxu0 %v1995_v60  ;;  %v1216_v60 = vld [vmem:[#allocation13 + $0xd8] sm:$0xff] }
 0x248   :  { %1662 = vmatprep.subr.bf16.mxu0 %v1988_v61  ;;  %v1220_v61 = vld [vmem:[#allocation13 + $0xf8] sm:$0xff] }
 0x249   :  { %v1983_v7 = vcombine.low %v1216_v60, %v1220_v61 }
 0x24b   :  { %1663 = vmatpush1.bf16.msra.mxu0 %v1987_v0  ;;  %v1982_v0 = vcombine.high %v1215_v58, %v1219_v59 }
 0x24c   :  { %1664 = vmatprep.subr.bf16.mxu0 %v1980_v1  ;;  %v1984_v1 = vcombine.high %v1216_v60, %v1220_v61 }
 0x24f   :  { %1665 = vmatpush1.bf16.msra.mxu0 %v1979_v2  ;;  %v1208_v2 = vld [vmem:[#allocation13 + $0x98] sm:$0xff] }
 0x250   :  { %1666 = vmatprep.subr.bf16.mxu0 %v1972_v5  ;;  %v1212_v5 = vld [vmem:[#allocation13 + $0xb8] sm:$0xff] }
 0x251   :  { %v1975_v15 = vcombine.low %v1208_v2, %v1212_v5 }
 0x253   :  { %1667 = vmatpush1.bf16.msra.mxu0 %v1971_v8  ;;  %v1974_v8 = vcombine.high %v1207_v3, %v1211_v4 }
 0x254   :  { %1668 = vmatprep.subr.bf16.mxu0 %v1964_v9  ;;  %v1976_v9 = vcombine.high %v1208_v2, %v1212_v5 }
 0x257   :  { %1669 = vmatpush1.bf16.msra.mxu0 %v1963_v10  ;;  %v1199_v10 = vld [vmem:[#allocation13 + $0x50] sm:$0xff] }
 0x258   :  { %1670 = vmatprep.subr.bf16.mxu0 %v1956_v18  ;;  %v1966_v16 = vcombine.high %v1199_v10, %v1203_v11  ;;  %v1191_v18 = vld [vmem:[#allocation13 + $0x10] sm:$0xff]  ;;  %v1965_v22 = vcombine.low %v1199_v10, %v1203_v11 }
 0x25b   :  { %1671 = vmatpush1.bf16.msra.mxu0 %v1955_v17  ;;  %v1968_v17 = vcombine.high %v1200_v12, %v1204_v13 }
 0x25c   :  { %1738 = vmatprep.subr.bf16.mxu0 %v2016_v26  ;;  %v1957_v26 = vcombine.low %v1191_v18, %v1195_v19 }
 0x2fe   :  { %v1181_v29 = vpop.f32.mrf.mxu0 }
 0x2ff   :  { %v1182_v30 = vadd.f32 %v1944_v28, %v1181_v29  ;;  %v1255_v28 = vlaneseq }
 0x300   :  { %v2198_v32 = vpop.f32.mrf.mxu0 }
 0x301   :  { %v1187_v36 = vmax.f32 %v1182_v30, 0.0  ;;  %v1256_v29 = vshrl.u32 %v1255_v28, 7  ;;  %v1253_v32 = vld [vmem:[%s2704_s11] sm:$0xff]  ;;  %s2529_s11 = smov [#allocation14]  }
 0x302   :  { %v1184_v37 = vpop.f32.mrf.mxu0  ;;  %s1841_s4 = sshll.u32 %s2529_s11, 4  ;;  %s1842_s4 = int_to_ptr.vmem [resolvable:$true] %s1841_s4 }
 0x303   :  { %v2681_v38 = vpack.c.bf16 %v1187_v36, %v1187_v36  ;;  %v1257_v30 = vsub.s32 0, %v1256_v29  ;;  %v1265_v31 = vsub.s32 2, %v1256_v29  ;;  %v1261_v33 = vsub.s32 1, %v1256_v29  ;;  %s2485_s22 = scalar_lea.vmem %s1842_s4, 1024  ;;  %p2490_p8 = scmp.lt.s32.totalorder %s1842_s4, %s1842_s4 }
 0x304   :  { %v2199_v42 = vpop.f32.mrf.mxu0  ;;  %v1269_v34 = vsub.s32 3, %v1256_v29  ;;  %v1285_v3 = vsub.s32 7, %v1256_v29  ;;  %p2486_p7 = scmp.ne.s32.totalorder %s1842_s4, %s2485_s22  ;;  %p2491_p9 = scmp.lt.s32.totalorder %s2485_s22, %s2485_s22 }
 0x305   :  { %1648 = vmatmul.mubr.bf16.vlgmr.msra.gmra.mxu1 %v2681_v38  ;;  %1689 = vmatmul.mubr.bf16.vlgmr.msra.gmra.mxu0 %v2681_v38  ;;  %v1258_v35 = vrot.slane %v1253_v32, %v1257_v30  ;;  %v1266_v36 = vrot.slane %v1253_v32, %v1265_v31  ;;  %v1262_v37 = vrot.slane %v1253_v32, %v1261_v33 }
 0x306   :  { %1698 = vmatpush1.bf16.msra.mxu1 %v2013_v24  ;;  %1739 = vmatpush1.bf16.msra.mxu0 %v2015_v25  ;;  %v1958_v24 = vcombine.high %v1191_v18, %v1195_v19  ;;  %v1960_v25 = vcombine.high %v1192_v20, %v1196_v21  ;;  %p2492_p10 = por %p2491_p9, %p2490_p8 }
 0x307   :  { %1699 = vmatprep.subr.bf16.mxu1 %v2006_v39  ;;  %1740 = vmatprep.subr.bf16.mxu0 %v2008_v40  ;;  %v1270_v39 = vrot.slane %v1253_v32, %v1269_v34 }
 0x308   :  { %1729 = vmatprep.mubr.bf16.mxu1 %v2528_v27  ;;  %1770 = vmatprep.mubr.bf16.mxu0 %v2528_v27  ;;  %v1959_v27 = vcombine.low %v1192_v20, %v1196_v21  ;;  %p2493_p11 = pnand %p2492_p10, %p2486_p7 }
 0x30a   :  { %1700 = vmatpush1.bf16.msra.mxu1 %v2005_v46  ;;  %1741 = vmatpush1.bf16.msra.mxu0 %v2007_v47 }
 0x30b   :  { %1701 = vmatprep.subr.bf16.mxu1 %v1998_v48  ;;  %1742 = vmatprep.subr.bf16.mxu0 %v2000_v49 }
 0x30e   :  { %1702 = vmatpush1.bf16.msra.mxu1 %v1997_v54  ;;  %1743 = vmatpush1.bf16.msra.mxu0 %v1999_v55 }
 0x30f   :  { %1703 = vmatprep.subr.bf16.mxu1 %v1990_v56  ;;  %1744 = vmatprep.subr.bf16.mxu0 %v1992_v57 }
 0x312   :  { %1704 = vmatpush1.bf16.msra.mxu1 %v1989_v62  ;;  %1745 = vmatpush1.bf16.msra.mxu0 %v1991_v63  ;;  %v1273_v63 = vsub.s32 4, %v1256_v29 }
 0x313   :  { %1705 = vmatprep.subr.bf16.mxu1 %v1982_v0  ;;  %1746 = vmatprep.subr.bf16.mxu0 %v1984_v1  ;;  %v1281_v0 = vsub.s32 6, %v1256_v29  ;;  %v1277_v1 = vsub.s32 5, %v1256_v29 }
 0x314   :  { %v1274_v4 = vrot.slane %v1253_v32, %v1273_v63 }
 0x315   :  { %v1282_v2 = vrot.slane %v1253_v32, %v1281_v0  ;;  %v1278_v5 = vrot.slane %v1253_v32, %v1277_v1 }
 0x316   :  { %1706 = vmatpush1.bf16.msra.mxu1 %v1981_v6  ;;  %1747 = vmatpush1.bf16.msra.mxu0 %v1983_v7  ;;  %v1286_v6 = vrot.slane %v1253_v32, %v1285_v3 }
 0x317   :  { %1707 = vmatprep.subr.bf16.mxu1 %v1974_v8  ;;  %1748 = vmatprep.subr.bf16.mxu0 %v1976_v9 }
 0x31a   :  { %1708 = vmatpush1.bf16.msra.mxu1 %v1973_v14  ;;  %1749 = vmatpush1.bf16.msra.mxu0 %v1975_v15 }
 0x31b   :  { %1709 = vmatprep.subr.bf16.mxu1 %v1966_v16  ;;  %1750 = vmatprep.subr.bf16.mxu0 %v1968_v17 }
 0x31e   :  { %1710 = vmatpush1.bf16.msra.mxu1 %v1965_v22  ;;  %1751 = vmatpush1.bf16.msra.mxu0 %v1967_v23 }
 0x31f   :  { %1711 = vmatprep.subr.bf16.mxu1 %v1958_v24  ;;  %1752 = vmatprep.subr.bf16.mxu0 %v1960_v25 }
 0x322   :  { %1712 = vmatpush1.bf16.msra.mxu1 %v1957_v26  ;;  %1753 = vmatpush1.bf16.msra.mxu0 %v1959_v27 }
 0x325   :  { %1730 = vmatmul.mubr.bf16.vlgmr.msra.gmra.mxu1 %v2681_v38  ;;  %1771 = vmatmul.mubr.bf16.vlgmr.msra.gmra.mxu0 %v2681_v38 }
 0x3c5   :  { %v1649_v40 = vpop.f32.mrf.mxu1  ;;  %v1690_v41 = vpop.f32.mrf.mxu0 }
 0x3c6   :  { %v1650_v42 = vadd.f32 %v1649_v40, %v1258_v35  ;;  %v1691_v43 = vadd.f32 %v1690_v41, %v1266_v36 }
 0x3c7   :  { %v1651_v44 = vpop.f32.mrf.mxu1  ;;  %v1692_v38 = vpop.f32.mrf.mxu0 }
 0x3c8   :  { %v2017_v45 = vmul.f32 -1.442695, %v1650_v42  ;;  %v2019_v46 = vmul.f32 -1.442695, %v1691_v43  ;;  %v1652_v47 = vadd.f32 %v1651_v44, %v1262_v37  ;;  %v1693_v48 = vadd.f32 %v1692_v38, %v1270_v39 }
 0x3c9   :  { %v1653_v49 = vpop.f32.mrf.mxu1  ;;  %v1694_v50 = vpop.f32.mrf.mxu0 }
 0x3ca   :  { %2313 = vpow2.f32 %v2017_v45  ;;  %v2018_v51 = vmul.f32 -1.442695, %v1652_v47  ;;  %v2020_v52 = vmul.f32 -1.442695, %v1693_v48 }
 0x3cb   :  { %2315 = vpow2.f32 %v2019_v46  ;;  %v1654_v53 = vpop.f32.mrf.mxu1  ;;  %v1695_v54 = vpop.f32.mrf.mxu0 }
 0x3cc   :  { %2317 = vpow2.f32 %v2018_v51 }
 0x3cd   :  { %2319 = vpow2.f32 %v2020_v52 }
 0x3d7   :  { %v2314_v55 = vpop.eup %2313 }
 0x3d8   :  { %v2316_v56 = vpop.eup %2315  ;;  %v1803_v57 = vadd.f32 1.0, %v2314_v55 }
 0x3d9   :  { %v2318_v58 = vpop.eup %2317  ;;  %v1805_v59 = vadd.f32 1.0, %v2316_v56 }
 0x3da   :  { %v2320_v60 = vpop.eup %2319  ;;  %2321 = vrcp.f32 %v1803_v57  ;;  %v1804_v61 = vadd.f32 1.0, %v2318_v58 }
 0x3db   :  { %2323 = vrcp.f32 %v1805_v59  ;;  %v1806_v62 = vadd.f32 1.0, %v2320_v60 }
 0x3dc   :  { %2325 = vrcp.f32 %v1804_v61 }
 0x3dd   :  { %2327 = vrcp.f32 %v1806_v62 }
 0x3e5   :  { %v1731_v7 = vpop.f32.mrf.mxu1  ;;  %v1772_v8 = vpop.f32.mrf.mxu0 }
 0x3e6   :  { %v1732_v9 = vadd.f32 %v1731_v7, %v1274_v4  ;;  %v1773_v10 = vadd.f32 %v1772_v8, %v1282_v2 }
 0x3e7   :  { %v2322_v11 = vpop.eup %2321  ;;  %v1733_v12 = vpop.f32.mrf.mxu1 }
 0x3e8   :  { %v1774_v13 = vpop.f32.mrf.mxu0  ;;  %v2324_v14 = vpop.eup %2323  ;;  %1827 = vst [vmem:[#allocation14] sm:$0xff] %v2322_v11  ;;  %v2021_v15 = vmul.f32 -1.442695, %v1732_v9  ;;  %v2023_v16 = vmul.f32 -1.442695, %v1773_v10  ;;  %v1734_v17 = vadd.f32 %v1733_v12, %v1278_v5 }
 0x3e9   :  { %v1775_v18 = vadd.f32 %v1774_v13, %v1286_v6  ;;  %v2326_v19 = vpop.eup %2325  ;;  %1829 = vst [vmem:[#allocation14 + $0x10] sm:$0xff] %v2324_v14  ;;  %v1735_v20 = vpop.f32.mrf.mxu1 }
 0x3ea   :  { %v1776_v21 = vpop.f32.mrf.mxu0  ;;  %v2328_v22 = vpop.eup %2327  ;;  %1828 = vst [vmem:[#allocation14 + $0x8] sm:$0xff] %v2326_v19  ;;  %2329 = vpow2.f32 %v2021_v15  ;;  %v2022_v23 = vmul.f32 -1.442695, %v1734_v17 }
 0x3eb   :  { %v2024_v24 = vmul.f32 -1.442695, %v1775_v18  ;;  %1830 = vst [vmem:[#allocation14 + $0x18] sm:$0xff] %v2328_v22  ;;  %2331 = vpow2.f32 %v2023_v16  ;;  %v1736_v25 = vpop.f32.mrf.mxu1 }
 0x3ec   :  { %v1777_v26 = vpop.f32.mrf.mxu0  ;;  %2333 = vpow2.f32 %v2022_v23 }
 0x3ed   :  { %2335 = vpow2.f32 %v2024_v24 }
 0x3f7   :  { %v2330_v27 = vpop.eup %2329 }
 0x3f8   :  { %v2332_v28 = vpop.eup %2331  ;;  %v1807_v29 = vadd.f32 1.0, %v2330_v27 }
 0x3f9   :  { %v2334_v30 = vpop.eup %2333  ;;  %v1809_v31 = vadd.f32 1.0, %v2332_v28 }
 0x3fa   :  { %v2336_v32 = vpop.eup %2335  ;;  %2337 = vrcp.f32 %v1807_v29  ;;  %v1808_v33 = vadd.f32 1.0, %v2334_v30 }
 0x3fb   :  { %2339 = vrcp.f32 %v1809_v31  ;;  %v1810_v34 = vadd.f32 1.0, %v2336_v32 }
 0x3fc   :  { %2341 = vrcp.f32 %v1808_v33 }
 0x3fd   :  { %2343 = vrcp.f32 %v1810_v34 }
 0x407   :  { %v2338_v35 = vpop.eup %2337 }
 0x408   :  { %v2340_v36 = vpop.eup %2339  ;;  %1831 = vst [vmem:[#allocation14 + $0x20] sm:$0xff] %v2338_v35 }
 0x409   :  { %v2342_v37 = vpop.eup %2341  ;;  %1833 = vst [vmem:[#allocation14 + $0x30] sm:$0xff] %v2340_v36 }
 0x40a   :  { %v2344_v39 = vpop.eup %2343  ;;  %1832 = vst [vmem:[#allocation14 + $0x28] sm:$0xff] %v2342_v37 }
 0x40b   :  { %1834 = vst [vmem:[#allocation14 + $0x38] sm:$0xff] %v2344_v39 }
 0x40c   :  { %2496 = shalt.err (!%p2493_p11)
}
 0x40d   :  { %1844 = dma.vmem_to_hbm [thread:$0]  %s1842_s4, 1024, %s2705_s12, [#allocation4]  }
 0x40e   :  { %2513 = dma.done.wait [#allocation4], 1024  }
 0x40f   :  { %2514 = vsyncadd [#allocation4], 4294966272 }
 0x410   :  { %1848 = vsyncpa [#allocation3], 1 }
 0x411   :  { %1849 = vsyncpa [#allocation6], 1 }
 0x412   :  { %1850 = vsyncpa [#allocation9], 1 }
 0x413   :  { %1851 = vsyncpa [#allocation12], 1 }
 0x414   :  { %1852 = vsyncpa [#allocation4], 1 }

</bundles_post_ra>
